<compile_context>
chip_gen: v7x
topology: tpu7x:2x2x1
jax: 0.10.0
libtpu: 0.0.40
codegen_flags: <defaults>
</compile_context>

<pallas_src>
import jax
import jax.numpy as jnp
from jax.experimental import pallas as pl
from jax.experimental.pallas import tpu as pltpu


# ----------------------------------------------------------------------------
# Grid sizing: 1 grid step on single-TC chips, 2 parallel steps on v7x.
# ----------------------------------------------------------------------------
def _detect_parallel_steps():
    try:
        kind = jax.devices()[0].device_kind.lower()
    except Exception:
        kind = ""
    # v7x exposes two TensorCores to one Pallas launch; keep >= 2 parallel
    # grid steps there so dimension_semantics=("parallel",) can shard them.
    return 2 if ("v7" in kind or "7x" in kind) else 1


_PARALLEL_STEPS = _detect_parallel_steps()


def _grid_steps(batch):
    g = _PARALLEL_STEPS
    return g if (batch >= g and batch % g == 0) else 1


# ----------------------------------------------------------------------------
# Kernel 1: fused DQN.get_action + dynamics_model   (action is None path)
# ----------------------------------------------------------------------------
def _fused_kernel(x_ref, qw1_ref, qw2_ref, w1s_ref, w2_ref, cpk_ref, rpk_ref,
                  o_ref):
    b_blk, chans, _ = x_ref.shape          # (Bblk, C, S)
    hq_dim = qw1_ref.shape[2]
    num_a = qw2_ref.shape[1]

    x = x_ref[...]                         # (Bblk, C, S) f32
    cpk = cpk_ref[...]                     # (Hd, A+2) f32: [w1a | b1 | b2(pad)]
    rpk = rpk_ref[...]                     # (1, Hq+A) f32: [qb1 | qb2]

    # ---- DQN (f32 for argmax fidelity): hq = flatten(x) @ W1 done as C
    #      per-channel partial matmuls on the (Bblk, S) slabs ----------------
    hq = jnp.zeros((b_blk, hq_dim), jnp.float32)
    for c in range(chans):                 # static unroll, C small
        hq = hq + jnp.dot(x[:, c, :], qw1_ref[c],
                          preferred_element_type=jnp.float32)
    hq = jnp.maximum(hq + rpk[:, 0:hq_dim], 0.0)            # (Bblk, Hq)
    q = jnp.dot(hq, qw2_ref[...], preferred_element_type=jnp.float32)
    q = q + rpk[:, hq_dim:hq_dim + num_a]                    # (Bblk, A)

    # argmax per row (first max index, torch semantics) -> one-hot
    idx = jax.lax.broadcasted_iota(jnp.int32, (b_blk, num_a), 1)
    qmax = jnp.max(q, axis=-1, keepdims=True)
    cand = jnp.where(q == qmax, idx.astype(jnp.float32), jnp.float32(num_a))
    a_idx = jnp.min(cand, axis=-1, keepdims=True)            # (Bblk, 1)
    onehot = (idx.astype(jnp.float32) == a_idx).astype(jnp.float32)

    # ---- dynamics_model(state, action), channel-major per element ----------
    w1a = cpk[:, 0:num_a]                  # (Hd, A)
    b1 = cpk[:, num_a:num_a + 1]           # (Hd, 1)
    b2 = cpk[0:chans, num_a + 1:num_a + 2]  # (C, 1)
    w1s = w1s_ref[...]                     # (Hd, C) bf16
    w2 = w2_ref[...]                       # (C, Hd) bf16
    for b in range(b_blk):                 # static unroll over the batch block
        act = jnp.sum(w1a * onehot[b:b + 1, :], axis=1, keepdims=True)
        bias = act + b1                    # pre-added (Hd,1) bias
        h = jnp.dot(w1s, x[b].astype(jnp.bfloat16),
                    preferred_element_type=jnp.float32)       # (Hd, S)
        h = jnp.maximum(h + bias, 0.0)
        y = jnp.dot(w2, h.astype(jnp.bfloat16),
                    preferred_element_type=jnp.float32)       # (C, S)
        o_ref[b] = y + b2


# ----------------------------------------------------------------------------
# Kernel 2: dynamics_model only (explicit action, scalar-prefetched into SMEM)
# ----------------------------------------------------------------------------
def _dyn_kernel(action_ref, x_ref, w1s_ref, w2_ref, cpk_ref, o_ref):
    g = pl.program_id(0)
    b_blk, chans, _ = x_ref.shape
    num_a = cpk_ref.shape[1] - 2

    x = x_ref[...]
    cpk = cpk_ref[...]
    w1a = cpk[:, 0:num_a]
    b1 = cpk[:, num_a:num_a + 1]
    b2 = cpk[0:chans, num_a + 1:num_a + 2]
    w1s = w1s_ref[...]
    w2 = w2_ref[...]
    idx = jax.lax.broadcasted_iota(jnp.int32, (1, num_a), 1)
    for b in range(b_blk):
        a = action_ref[g * b_blk + b]                         # SMEM scalar
        onehot = (idx == a).astype(jnp.float32)               # (1, A)
        act = jnp.sum(w1a * onehot, axis=1, keepdims=True)
        bias = act + b1
        h = jnp.dot(w1s, x[b].astype(jnp.bfloat16),
                    preferred_element_type=jnp.float32)
        h = jnp.maximum(h + bias, 0.0)
        y = jnp.dot(w2, h.astype(jnp.bfloat16),
                    preferred_element_type=jnp.float32)
        o_ref[b] = y + b2


# ----------------------------------------------------------------------------
# Wrappers
# ----------------------------------------------------------------------------
def _pack_dyn_consts(dyn_params, c):
    """Pack (w1a | b1 | b2-padded) into one (Hd, A+2) f32 array."""
    w1a = dyn_params["w1a"].astype(jnp.float32)       # (Hd, A)
    b1 = dyn_params["b1"]                             # (Hd, 1)
    hd = w1a.shape[0]
    b2p = jnp.zeros((hd, 1), jnp.float32).at[:c, :].set(dyn_params["b2"])
    return jnp.concatenate([w1a, b1, b2p], axis=1)


@jax.jit
def _forward_with_dqn(state, dqn_params, dyn_params):
    B, C, H, W = state.shape
    S = H * W
    G = _grid_steps(B)
    Bblk = B // G
    x_cm = state.reshape(B, C, S)                     # free reshape, NCHW kept
    Hq = dqn_params["w1"].shape[1]
    A = dqn_params["w2"].shape[1]
    Hd = dyn_params["w1s"].shape[0]

    qw1 = dqn_params["w1"].reshape(C, S, Hq)          # (c,s)-major == NCHW flatten
    rowpack = jnp.concatenate([dqn_params["b1"], dqn_params["b2"]], axis=1)
    colpack = _pack_dyn_consts(dyn_params, C)

    out = pl.pallas_call(
        _fused_kernel,
        out_shape=jax.ShapeDtypeStruct((B, C, S), jnp.float32),
        grid_spec=pltpu.PrefetchScalarGridSpec(
            num_scalar_prefetch=0,
            grid=(G,),
            in_specs=[
                pl.BlockSpec((Bblk, C, S), lambda g: (g, 0, 0)),   # state block
                pl.BlockSpec((C, S, Hq), lambda g: (0, 0, 0)),     # DQN W1
                pl.BlockSpec((Hq, A), lambda g: (0, 0)),           # DQN W2
                pl.BlockSpec((Hd, C), lambda g: (0, 0)),           # dyn W1 (state)
                pl.BlockSpec((C, Hd), lambda g: (0, 0)),           # dyn W2
                pl.BlockSpec((Hd, A + 2), lambda g: (0, 0)),       # packed w1a|b1|b2
                pl.BlockSpec((1, Hq + A), lambda g: (0, 0)),       # packed qb1|qb2
            ],
            out_specs=pl.BlockSpec((Bblk, C, S), lambda g: (g, 0, 0)),
        ),
        compiler_params=pltpu.CompilerParams(
            dimension_semantics=("parallel",),
        ),
    )(x_cm, qw1, dqn_params["w2"], dyn_params["w1s"], dyn_params["w2"],
      colpack, rowpack)
    return out.reshape(B, C, H, W)


@jax.jit
def _forward_with_action(state, action, dyn_params):
    B, C, H, W = state.shape
    S = H * W
    G = _grid_steps(B)
    Bblk = B // G
    x_cm = state.reshape(B, C, S)
    A = dyn_params["w1a"].shape[1]
    Hd = dyn_params["w1s"].shape[0]
    colpack = _pack_dyn_consts(dyn_params, C)

    out = pl.pallas_call(
        _dyn_kernel,
        out_shape=jax.ShapeDtypeStruct((B, C, S), jnp.float32),
        grid_spec=pltpu.PrefetchScalarGridSpec(
            num_scalar_prefetch=1,                               # action -> SMEM
            grid=(G,),
            in_specs=[
                pl.BlockSpec((Bblk, C, S), lambda g, act: (g, 0, 0)),
                pl.BlockSpec((Hd, C), lambda g, act: (0, 0)),
                pl.BlockSpec((C, Hd), lambda g, act: (0, 0)),
                pl.BlockSpec((Hd, A + 2), lambda g, act: (0, 0)),
            ],
            out_specs=pl.BlockSpec((Bblk, C, S), lambda g, act: (g, 0, 0)),
        ),
        compiler_params=pltpu.CompilerParams(
            dimension_semantics=("parallel",),
        ),
    )(action.astype(jnp.int32), x_cm,
      dyn_params["w1s"], dyn_params["w2"], colpack)
    return out.reshape(B, C, H, W)


def imagination_core_forward(state, dqn_params, dyn_params, action=None):
    # torch.no_grad()/.detach() are no-ops in a pure inference forward.
    if action is None:
        return _forward_with_dqn(state, dqn_params, dyn_params)
    return _forward_with_action(state, action, dyn_params)


# ----------------------------------------------------------------------------
# Deterministic parameters and pure-JAX references
# ----------------------------------------------------------------------------
def _init_params(key, c, h, w, num_actions, dqn_hidden, dyn_hidden):
    k = jax.random.split(key, 5)
    s_in = c * h * w
    bf16 = jnp.bfloat16
    # DQN weights kept in float32 so the argmax matches an fp32 torch DQN.
    dqn = {
        "w1": jax.random.normal(k[0], (s_in, dqn_hidden), jnp.float32) * 0.05,
        "b1": jnp.zeros((1, dqn_hidden), jnp.float32),
        "w2": jax.random.normal(k[1], (dqn_hidden, num_actions), jnp.float32) * 0.05,
        "b2": jnp.zeros((1, num_actions), jnp.float32),
    }
    # Dynamics weights stored channel-major / transposed for the kernel:
    #   layer1: h = W1s @ x_cm + W1a @ one_hot(a) + b1
    #   layer2: y = W2 @ relu(h) + b2
    dyn = {
        "w1s": (jax.random.normal(k[2], (dyn_hidden, c), jnp.float32) * 0.1).astype(bf16),
        "w1a": (jax.random.normal(k[3], (dyn_hidden, num_actions), jnp.float32) * 0.1).astype(bf16),
        "b1": jnp.zeros((dyn_hidden, 1), jnp.float32),
        "b2": jnp.zeros((c, 1), jnp.float32),
        "w2": (jax.random.normal(k[4], (c, dyn_hidden), jnp.float32) * 0.1).astype(bf16),
    }
    return dqn, dyn


def _dqn_reference_action(state, dqn):
    B = state.shape[0]
    xf = state.reshape(B, -1)
    hq = jnp.maximum(xf @ dqn["w1"] + dqn["b1"], 0.0)
    q = hq @ dqn["w2"] + dqn["b2"]
    return jnp.argmax(q, axis=-1)


def _dynamics_reference(state, action, dyn):
    """Pure-JAX reference mirroring the kernel's bf16-matmul / f32-accum math."""
    B, C, H, W = state.shape
    S = H * W
    x = state.reshape(B, C, S).astype(jnp.bfloat16)
    A = dyn["w1a"].shape[1]
    onehot = jax.nn.one_hot(action, A, dtype=jnp.float32)              # (B, A)
    act = onehot @ dyn["w1a"].astype(jnp.float32).T                    # (B, Hd)
    h = jnp.einsum("hc,bcs->bhs", dyn["w1s"], x,
                   preferred_element_type=jnp.float32)
    h = jnp.maximum(h + act[:, :, None] + dyn["b1"][None], 0.0)
    y = jnp.einsum("ch,bhs->bcs", dyn["w2"], h.astype(jnp.bfloat16),
                   preferred_element_type=jnp.float32)
    y = y + dyn["b2"][None]
    return y.reshape(B, C, H, W)


if __name__ == "__main__":
    B, C, H, W = 2, 4, 16, 16
    NUM_ACTIONS = 4
    DQN_HIDDEN = 32
    DYN_HIDDEN = 32

    key = jax.random.PRNGKey(0)
    k_state, k_params = jax.random.split(key)
    state = jax.random.normal(k_state, (B, C, H, W), jnp.float32)   # NCHW, as in torch
    dqn_params, dyn_params = _init_params(
        k_params, C, H, W, NUM_ACTIONS, DQN_HIDDEN, DYN_HIDDEN)

    # Path 1: action inferred by the DQN inside the single fused kernel.
    next_state = imagination_core_forward(state, dqn_params, dyn_params)
    next_state = jax.block_until_ready(next_state)
    assert next_state.shape == (B, C, H, W), next_state.shape
    assert bool(jnp.all(jnp.isfinite(next_state)))
    ref_action = _dqn_reference_action(state, dqn_params)
    ref1 = _dynamics_reference(state, ref_action, dyn_params)
    err1 = float(jnp.max(jnp.abs(next_state - ref1)))
    assert err1 < 2e-2, err1

    # Path 2: explicit action (scalar-prefetched into SMEM).
    explicit_action = jnp.array([1, 3], dtype=jnp.int32)
    next_state2 = imagination_core_forward(
        state, dqn_params, dyn_params, action=explicit_action)
    next_state2 = jax.block_until_ready(next_state2)
    assert next_state2.shape == (B, C, H, W), next_state2.shape
    ref2 = _dynamics_reference(state, explicit_action, dyn_params)
    err2 = float(jnp.max(jnp.abs(next_state2 - ref2)))
    assert err2 < 2e-2, err2

    print("KERNEL_OK")
</pallas_src>

<mosaic_0001>
module attributes {stable_mosaic.version = 11 : i64} {
  func.func @_fused_kernel(%arg0: i32, %arg1: memref<2x4x256xf32, #tpu.memory_space<vmem>>, %arg2: memref<4x256x32xf32, #tpu.memory_space<vmem>>, %arg3: memref<32x4xf32, #tpu.memory_space<vmem>>, %arg4: memref<32x4xbf16, #tpu.memory_space<vmem>>, %arg5: memref<4x32xbf16, #tpu.memory_space<vmem>>, %arg6: memref<32x6xf32, #tpu.memory_space<vmem>>, %arg7: memref<1x36xf32, #tpu.memory_space<vmem>>, %arg8: memref<2x4x256xf32, #tpu.memory_space<vmem>>) attributes {dimension_semantics = [#tpu.dimension_semantics<parallel>], iteration_bounds = array<i64: 1>, scalar_prefetch = 0 : i64, scratch_operands = 0 : i64, tpu.core_type = #tpu.core_type<tc>, window_params = [{transform_indices = @transform_0, window_bounds = array<i64: 2, 4, 256>}, {pipeline_mode = #tpu.pipeline_mode<synchronous>, transform_indices = @transform_1, window_bounds = array<i64: 4, 256, 32>}, {pipeline_mode = #tpu.pipeline_mode<synchronous>, transform_indices = @transform_2, window_bounds = array<i64: 32, 4>}, {pipeline_mode = #tpu.pipeline_mode<synchronous>, transform_indices = @transform_3, window_bounds = array<i64: 32, 4>}, {pipeline_mode = #tpu.pipeline_mode<synchronous>, transform_indices = @transform_4, window_bounds = array<i64: 4, 32>}, {pipeline_mode = #tpu.pipeline_mode<synchronous>, transform_indices = @transform_5, window_bounds = array<i64: 32, 6>}, {pipeline_mode = #tpu.pipeline_mode<synchronous>, transform_indices = @transform_6, window_bounds = array<i64: 1, 36>}, {transform_indices = @transform_7, window_bounds = array<i64: 2, 4, 256>}]} {
    %c0 = arith.constant 0 : index
    %c0_0 = arith.constant 0 : index
    %c0_1 = arith.constant 0 : index
    %0 = vector.load %arg1[%c0, %c0_0, %c0_1] : memref<2x4x256xf32, #tpu.memory_space<vmem>>, vector<2x4x256xf32>
    %c0_2 = arith.constant 0 : index
    %c0_3 = arith.constant 0 : index
    %1 = vector.load %arg6[%c0_2, %c0_3] : memref<32x6xf32, #tpu.memory_space<vmem>>, vector<32x6xf32>
    %c0_4 = arith.constant 0 : index
    %c0_5 = arith.constant 0 : index
    %2 = vector.load %arg7[%c0_4, %c0_5] : memref<1x36xf32, #tpu.memory_space<vmem>>, vector<1x36xf32>
    %cst = arith.constant 0.000000e+00 : f32
    %3 = vector.broadcast %cst : f32 to vector<2x32xf32>
    %4 = vector.extract_strided_slice %0 {offsets = [0, 0, 0], sizes = [2, 1, 256], strides = [1, 1, 1]} : vector<2x4x256xf32> to vector<2x1x256xf32>
    %5 = vector.shape_cast %4 : vector<2x1x256xf32> to vector<2x256xf32>
    %c0_6 = arith.constant 0 : index
    %c0_7 = arith.constant 0 : index
    %c0_8 = arith.constant 0 : index
    %6 = vector.load %arg2[%c0_6, %c0_7, %c0_8] : memref<4x256x32xf32, #tpu.memory_space<vmem>>, vector<1x256x32xf32>
    %7 = vector.shape_cast %6 : vector<1x256x32xf32> to vector<256x32xf32>
    %cst_9 = arith.constant dense<0.000000e+00> : vector<2x32xf32>
    %8 = tpu.matmul %5, %7, %cst_9 {dimension_numbers = #tpu.dot_dimension_numbers<[1], [0], [0], [1], [0, 0, 1, 1], [], []>} : vector<2x256xf32>, vector<256x32xf32>, vector<2x32xf32> -> vector<2x32xf32>
    %9 = arith.addf %3, %8 : vector<2x32xf32>
    %10 = vector.extract_strided_slice %0 {offsets = [0, 1, 0], sizes = [2, 1, 256], strides = [1, 1, 1]} : vector<2x4x256xf32> to vector<2x1x256xf32>
    %11 = vector.shape_cast %10 : vector<2x1x256xf32> to vector<2x256xf32>
    %c1 = arith.constant 1 : index
    %c0_10 = arith.constant 0 : index
    %c0_11 = arith.constant 0 : index
    %12 = vector.load %arg2[%c1, %c0_10, %c0_11] : memref<4x256x32xf32, #tpu.memory_space<vmem>>, vector<1x256x32xf32>
    %13 = vector.shape_cast %12 : vector<1x256x32xf32> to vector<256x32xf32>
    %cst_12 = arith.constant dense<0.000000e+00> : vector<2x32xf32>
    %14 = tpu.matmul %11, %13, %cst_12 {dimension_numbers = #tpu.dot_dimension_numbers<[1], [0], [0], [1], [0, 0, 1, 1], [], []>} : vector<2x256xf32>, vector<256x32xf32>, vector<2x32xf32> -> vector<2x32xf32>
    %15 = arith.addf %9, %14 : vector<2x32xf32>
    %16 = vector.extract_strided_slice %0 {offsets = [0, 2, 0], sizes = [2, 1, 256], strides = [1, 1, 1]} : vector<2x4x256xf32> to vector<2x1x256xf32>
    %17 = vector.shape_cast %16 : vector<2x1x256xf32> to vector<2x256xf32>
    %c2 = arith.constant 2 : index
    %c0_13 = arith.constant 0 : index
    %c0_14 = arith.constant 0 : index
    %18 = vector.load %arg2[%c2, %c0_13, %c0_14] : memref<4x256x32xf32, #tpu.memory_space<vmem>>, vector<1x256x32xf32>
    %19 = vector.shape_cast %18 : vector<1x256x32xf32> to vector<256x32xf32>
    %cst_15 = arith.constant dense<0.000000e+00> : vector<2x32xf32>
    %20 = tpu.matmul %17, %19, %cst_15 {dimension_numbers = #tpu.dot_dimension_numbers<[1], [0], [0], [1], [0, 0, 1, 1], [], []>} : vector<2x256xf32>, vector<256x32xf32>, vector<2x32xf32> -> vector<2x32xf32>
    %21 = arith.addf %15, %20 : vector<2x32xf32>
    %22 = vector.extract_strided_slice %0 {offsets = [0, 3, 0], sizes = [2, 1, 256], strides = [1, 1, 1]} : vector<2x4x256xf32> to vector<2x1x256xf32>
    %23 = vector.shape_cast %22 : vector<2x1x256xf32> to vector<2x256xf32>
    %c3 = arith.constant 3 : index
    %c0_16 = arith.constant 0 : index
    %c0_17 = arith.constant 0 : index
    %24 = vector.load %arg2[%c3, %c0_16, %c0_17] : memref<4x256x32xf32, #tpu.memory_space<vmem>>, vector<1x256x32xf32>
    %25 = vector.shape_cast %24 : vector<1x256x32xf32> to vector<256x32xf32>
    %cst_18 = arith.constant dense<0.000000e+00> : vector<2x32xf32>
    %26 = tpu.matmul %23, %25, %cst_18 {dimension_numbers = #tpu.dot_dimension_numbers<[1], [0], [0], [1], [0, 0, 1, 1], [], []>} : vector<2x256xf32>, vector<256x32xf32>, vector<2x32xf32> -> vector<2x32xf32>
    %27 = arith.addf %21, %26 : vector<2x32xf32>
    %28 = vector.extract_strided_slice %2 {offsets = [0, 0], sizes = [1, 32], strides = [1, 1]} : vector<1x36xf32> to vector<1x32xf32>
    %29 = vector.broadcast %28 : vector<1x32xf32> to vector<2x32xf32>
    %30 = arith.addf %27, %29 : vector<2x32xf32>
    %cst_19 = arith.constant 0.000000e+00 : f32
    %31 = vector.broadcast %cst_19 : f32 to vector<2x32xf32>
    %32 = arith.maximumf %30, %31 : vector<2x32xf32>
    %c0_20 = arith.constant 0 : index
    %c0_21 = arith.constant 0 : index
    %33 = vector.load %arg3[%c0_20, %c0_21] : memref<32x4xf32, #tpu.memory_space<vmem>>, vector<32x4xf32>
    %cst_22 = arith.constant dense<0.000000e+00> : vector<2x4xf32>
    %34 = tpu.matmul %32, %33, %cst_22 {dimension_numbers = #tpu.dot_dimension_numbers<[1], [0], [0], [1], [0, 0, 1, 1], [], []>} : vector<2x32xf32>, vector<32x4xf32>, vector<2x4xf32> -> vector<2x4xf32>
    %35 = vector.extract_strided_slice %2 {offsets = [0, 32], sizes = [1, 4], strides = [1, 1]} : vector<1x36xf32> to vector<1x4xf32>
    %36 = vector.broadcast %35 : vector<1x4xf32> to vector<2x4xf32>
    %37 = arith.addf %34, %36 : vector<2x4xf32>
    %38 = tpu.iota {dimensions = array<i32: 1>} : vector<2x4xi32>
    %cst_23 = arith.constant dense<0xFF800000> : vector<2xf32>
    %39 = vector.multi_reduction <maximumf>, %37, %cst_23 [1] : vector<2x4xf32> to vector<2xf32>
    %40 = vector.shape_cast %39 : vector<2xf32> to vector<2x1xf32>
    %41 = vector.broadcast %40 : vector<2x1xf32> to vector<2x4xf32>
    %42 = arith.cmpf oeq, %37, %41 : vector<2x4xf32>
    %43 = arith.sitofp %38 : vector<2x4xi32> to vector<2x4xf32>
    %cst_24 = arith.constant 4.000000e+00 : f32
    %44 = vector.broadcast %cst_24 : f32 to vector<2x4xf32>
    %45 = arith.select %42, %43, %44 : vector<2x4xi1>, vector<2x4xf32>
    %cst_25 = arith.constant dense<0x7F800000> : vector<2xf32>
    %46 = vector.multi_reduction <minimumf>, %45, %cst_25 [1] : vector<2x4xf32> to vector<2xf32>
    %47 = vector.shape_cast %46 : vector<2xf32> to vector<2x1xf32>
    %48 = arith.sitofp %38 : vector<2x4xi32> to vector<2x4xf32>
    %49 = vector.broadcast %47 : vector<2x1xf32> to vector<2x4xf32>
    %50 = arith.cmpf oeq, %48, %49 : vector<2x4xf32>
    %51 = arith.extui %50 : vector<2x4xi1> to vector<2x4xi32>
    %52 = arith.sitofp %51 : vector<2x4xi32> to vector<2x4xf32>
    %53 = vector.extract_strided_slice %1 {offsets = [0, 0], sizes = [32, 4], strides = [1, 1]} : vector<32x6xf32> to vector<32x4xf32>
    %54 = vector.extract_strided_slice %1 {offsets = [0, 4], sizes = [32, 1], strides = [1, 1]} : vector<32x6xf32> to vector<32x1xf32>
    %55 = vector.extract_strided_slice %1 {offsets = [0, 5], sizes = [4, 1], strides = [1, 1]} : vector<32x6xf32> to vector<4x1xf32>
    %c0_26 = arith.constant 0 : index
    %c0_27 = arith.constant 0 : index
    %56 = vector.load %arg4[%c0_26, %c0_27] : memref<32x4xbf16, #tpu.memory_space<vmem>>, vector<32x4xbf16>
    %c0_28 = arith.constant 0 : index
    %c0_29 = arith.constant 0 : index
    %57 = vector.load %arg5[%c0_28, %c0_29] : memref<4x32xbf16, #tpu.memory_space<vmem>>, vector<4x32xbf16>
    %58 = vector.extract_strided_slice %52 {offsets = [0, 0], sizes = [1, 4], strides = [1, 1]} : vector<2x4xf32> to vector<1x4xf32>
    %59 = vector.broadcast %58 : vector<1x4xf32> to vector<32x4xf32>
    %60 = arith.mulf %53, %59 : vector<32x4xf32>
    %cst_30 = arith.constant dense<0.000000e+00> : vector<32xf32>
    %61 = vector.multi_reduction <add>, %60, %cst_30 [1] : vector<32x4xf32> to vector<32xf32>
    %62 = vector.shape_cast %61 : vector<32xf32> to vector<32x1xf32>
    %63 = arith.addf %62, %54 : vector<32x1xf32>
    %64 = vector.extract_strided_slice %0 {offsets = [0, 0, 0], sizes = [1, 4, 256], strides = [1, 1, 1]} : vector<2x4x256xf32> to vector<1x4x256xf32>
    %65 = vector.shape_cast %64 : vector<1x4x256xf32> to vector<4x256xf32>
    %66 = arith.truncf %65 : vector<4x256xf32> to vector<4x256xbf16>
    %cst_31 = arith.constant dense<0.000000e+00> : vector<32x256xf32>
    %67 = tpu.matmul %56, %66, %cst_31 {dimension_numbers = #tpu.dot_dimension_numbers<[1], [0], [0], [1], [0, 0, 1, 1], [], []>} : vector<32x4xbf16>, vector<4x256xbf16>, vector<32x256xf32> -> vector<32x256xf32>
    %68 = vector.broadcast %63 : vector<32x1xf32> to vector<32x256xf32>
    %69 = arith.addf %67, %68 : vector<32x256xf32>
    %cst_32 = arith.constant 0.000000e+00 : f32
    %70 = vector.broadcast %cst_32 : f32 to vector<32x256xf32>
    %71 = arith.maximumf %69, %70 : vector<32x256xf32>
    %72 = arith.truncf %71 : vector<32x256xf32> to vector<32x256xbf16>
    %cst_33 = arith.constant dense<0.000000e+00> : vector<4x256xf32>
    %73 = tpu.matmul %57, %72, %cst_33 {dimension_numbers = #tpu.dot_dimension_numbers<[1], [0], [0], [1], [0, 0, 1, 1], [], []>} : vector<4x32xbf16>, vector<32x256xbf16>, vector<4x256xf32> -> vector<4x256xf32>
    %74 = vector.broadcast %55 : vector<4x1xf32> to vector<4x256xf32>
    %75 = arith.addf %73, %74 : vector<4x256xf32>
    %c0_34 = arith.constant 0 : index
    %c0_35 = arith.constant 0 : index
    %c0_36 = arith.constant 0 : index
    %76 = vector.load %arg8[%c0_34, %c0_35, %c0_36] : memref<2x4x256xf32, #tpu.memory_space<vmem>>, vector<1x4x256xf32>
    %77 = vector.shape_cast %76 : vector<1x4x256xf32> to vector<4x256xf32>
    %78 = vector.shape_cast %75 : vector<4x256xf32> to vector<1x4x256xf32>
    tpu.vector_store %arg8[%c0_34, %c0_35, %c0_36], %78 {strides = array<i32>} : memref<2x4x256xf32, #tpu.memory_space<vmem>>, vector<1x4x256xf32>,
    %79 = vector.extract_strided_slice %52 {offsets = [1, 0], sizes = [1, 4], strides = [1, 1]} : vector<2x4xf32> to vector<1x4xf32>
    %80 = vector.broadcast %79 : vector<1x4xf32> to vector<32x4xf32>
    %81 = arith.mulf %53, %80 : vector<32x4xf32>
    %cst_37 = arith.constant dense<0.000000e+00> : vector<32xf32>
    %82 = vector.multi_reduction <add>, %81, %cst_37 [1] : vector<32x4xf32> to vector<32xf32>
    %83 = vector.shape_cast %82 : vector<32xf32> to vector<32x1xf32>
    %84 = arith.addf %83, %54 : vector<32x1xf32>
    %85 = vector.extract_strided_slice %0 {offsets = [1, 0, 0], sizes = [1, 4, 256], strides = [1, 1, 1]} : vector<2x4x256xf32> to vector<1x4x256xf32>
    %86 = vector.shape_cast %85 : vector<1x4x256xf32> to vector<4x256xf32>
    %87 = arith.truncf %86 : vector<4x256xf32> to vector<4x256xbf16>
    %cst_38 = arith.constant dense<0.000000e+00> : vector<32x256xf32>
    %88 = tpu.matmul %56, %87, %cst_38 {dimension_numbers = #tpu.dot_dimension_numbers<[1], [0], [0], [1], [0, 0, 1, 1], [], []>} : vector<32x4xbf16>, vector<4x256xbf16>, vector<32x256xf32> -> vector<32x256xf32>
    %89 = vector.broadcast %84 : vector<32x1xf32> to vector<32x256xf32>
    %90 = arith.addf %88, %89 : vector<32x256xf32>
    %cst_39 = arith.constant 0.000000e+00 : f32
    %91 = vector.broadcast %cst_39 : f32 to vector<32x256xf32>
    %92 = arith.maximumf %90, %91 : vector<32x256xf32>
    %93 = arith.truncf %92 : vector<32x256xf32> to vector<32x256xbf16>
    %cst_40 = arith.constant dense<0.000000e+00> : vector<4x256xf32>
    %94 = tpu.matmul %57, %93, %cst_40 {dimension_numbers = #tpu.dot_dimension_numbers<[1], [0], [0], [1], [0, 0, 1, 1], [], []>} : vector<4x32xbf16>, vector<32x256xbf16>, vector<4x256xf32> -> vector<4x256xf32>
    %95 = vector.broadcast %55 : vector<4x1xf32> to vector<4x256xf32>
    %96 = arith.addf %94, %95 : vector<4x256xf32>
    %c1_41 = arith.constant 1 : index
    %c0_42 = arith.constant 0 : index
    %c0_43 = arith.constant 0 : index
    %97 = vector.load %arg8[%c1_41, %c0_42, %c0_43] : memref<2x4x256xf32, #tpu.memory_space<vmem>>, vector<1x4x256xf32>
    %98 = vector.shape_cast %97 : vector<1x4x256xf32> to vector<4x256xf32>
    %99 = vector.shape_cast %96 : vector<4x256xf32> to vector<1x4x256xf32>
    tpu.vector_store %arg8[%c1_41, %c0_42, %c0_43], %99 {strides = array<i32>} : memref<2x4x256xf32, #tpu.memory_space<vmem>>, vector<1x4x256xf32>,
    return
  }
  func.func @transform_0(%arg0: i32) -> (i32, i32, i32) {
    %c0_i32 = arith.constant 0 : i32
    %c0_i32_0 = arith.constant 0 : i32
    %c0_i32_1 = arith.constant 0 : i32
    return %arg0, %c0_i32, %c0_i32_0 : i32, i32, i32
  }
  func.func @transform_1(%arg0: i32) -> (i32, i32, i32) {
    %c0_i32 = arith.constant 0 : i32
    %c0_i32_0 = arith.constant 0 : i32
    %c0_i32_1 = arith.constant 0 : i32
    %c0_i32_2 = arith.constant 0 : i32
    return %c0_i32, %c0_i32_0, %c0_i32_1 : i32, i32, i32
  }
  func.func @transform_2(%arg0: i32) -> (i32, i32) {
    %c0_i32 = arith.constant 0 : i32
    %c0_i32_0 = arith.constant 0 : i32
    %c0_i32_1 = arith.constant 0 : i32
    return %c0_i32, %c0_i32_0 : i32, i32
  }
  func.func @transform_3(%arg0: i32) -> (i32, i32) {
    %c0_i32 = arith.constant 0 : i32
    %c0_i32_0 = arith.constant 0 : i32
    %c0_i32_1 = arith.constant 0 : i32
    return %c0_i32, %c0_i32_0 : i32, i32
  }
  func.func @transform_4(%arg0: i32) -> (i32, i32) {
    %c0_i32 = arith.constant 0 : i32
    %c0_i32_0 = arith.constant 0 : i32
    %c0_i32_1 = arith.constant 0 : i32
    return %c0_i32, %c0_i32_0 : i32, i32
  }
  func.func @transform_5(%arg0: i32) -> (i32, i32) {
    %c0_i32 = arith.constant 0 : i32
    %c0_i32_0 = arith.constant 0 : i32
    %c0_i32_1 = arith.constant 0 : i32
    return %c0_i32, %c0_i32_0 : i32, i32
  }
  func.func @transform_6(%arg0: i32) -> (i32, i32) {
    %c0_i32 = arith.constant 0 : i32
    %c0_i32_0 = arith.constant 0 : i32
    %c0_i32_1 = arith.constant 0 : i32
    return %c0_i32, %c0_i32_0 : i32, i32
  }
  func.func @transform_7(%arg0: i32) -> (i32, i32, i32) {
    %c0_i32 = arith.constant 0 : i32
    %c0_i32_0 = arith.constant 0 : i32
    %c0_i32_1 = arith.constant 0 : i32
    return %arg0, %c0_i32, %c0_i32_0 : i32, i32, i32
  }
}

</mosaic_0001>

<bundles_post_ra>
// kernel: _forward_with_dqn.1
= control target key start
LH: loop header
LB: loop body
LE: loop exit
PB: predicated region body
PF: predicated region fallthrough
CT: control target
= control target key end

     0   :  { %v101_v47 = vlaneseq  ;;  %vm117_vm0 = vcmask 1041409   ;;  %vm1415_vm1 = vmmov 0   ;;  %s1417_s10 = smov 96   ;;  %vm545_vm2 = vcmask 261120   ;;  %s1981_s1 = inlined_call_operand.vmem [shape: f32[4,256,32], index: 1, kind: input, shape index: {}]   ;;  %s1982_s0 = inlined_call_operand.vmem [shape: f32[2,4,256], index: 0, kind: input, shape index: {}]   ;;  %s1983_s2 = inlined_call_operand.vmem [shape: f32[32,4], index: 2, kind: input, shape index: {}]   ;;  %s1984_s6 = inlined_call_operand.vmem [shape: f32[1,36], index: 6, kind: input, shape index: {}]   ;;  %s1985_s3 = inlined_call_operand.vmem [shape: bf16[32,4], index: 3, kind: input, shape index: {}]   ;;  %s1986_s5 = inlined_call_operand.vmem [shape: f32[32,6], index: 5, kind: input, shape index: {}]   ;;  %s1987_s4 = inlined_call_operand.vmem [shape: bf16[4,32], index: 4, kind: input, shape index: {}]   ;;  %s1988_s7 = inlined_call_operand.vmem [shape: f32[2,4,256], index: 7, kind: output, shape index: {}]  }
   0x1   :  { %v1016_v0 = vld [vmem:[%s1981_s1 + $0x180] sm:$0xff]  ;;  %v1017_v1 = vld [vmem:[%s1981_s1 + $0x188] sm:$0xff]  ;;  %v1018_v11 = vld [vmem:[%s1981_s1 + $0x190] sm:$0xff]  ;;  %vm621_vm3 = vcmask 25600   ;;  %vm704_vm5 = vcmask 1041408   ;;  %vm647_vm6 = vcmask 31744  }
   0x2   :  { %v50_v2 = vld [vmem:[%s1981_s1 + $0x80] sm:$0xff]  ;;  %v1266_v3 = vpack.c.bf16 %v1017_v1, %v1016_v0  ;;  %v51_v4 = vld [vmem:[%s1981_s1 + $0x88] sm:$0xff]  ;;  %v1019_v13 = vld [vmem:[%s1981_s1 + $0x198] sm:$0xff]  ;;  %v1588_v61 = vshrl.u32 %v101_v47, 7 }
   0x3   :  { %v1000_v5 = vld [vmem:[%s1981_s1 + $0x100] sm:$0xff]  ;;  %v1001_v6 = vld [vmem:[%s1981_s1 + $0x108] sm:$0xff]  ;;  %v1298_v7 = vpack.c.bf16 %v51_v4, %v50_v2  ;;  %v52_v14 = vld [vmem:[%s1981_s1 + $0x90] sm:$0xff]  ;;  %v1270_v16 = vpack.c.bf16 %v1019_v13, %v1018_v11 }
   0x4   :  { %v1268_v8 = vpack.c.bf16 %v1001_v6, %v1000_v5  ;;  %v34_v9 = vld [vmem:[%s1981_s1] sm:$0xff]  ;;  %v35_v10 = vld [vmem:[%s1981_s1 + $0x8] sm:$0xff]  ;;  %1267 = vmatprep.subr.bf16.mxu0 %v1266_v3  ;;  %v53_v15 = vld [vmem:[%s1981_s1 + $0x98] sm:$0xff]  ;;  %v198_v11 = vsub.s32 4, %v1588_v61 }
   0x5   :  { %v1300_v12 = vpack.c.bf16 %v35_v10, %v34_v9  ;;  %1299 = vmatprep.subr.bf16.mxu1 %v1298_v7  ;;  %v1302_v17 = vpack.c.bf16 %v53_v15, %v52_v14  ;;  %v1002_v18 = vld [vmem:[%s1981_s1 + $0x110] sm:$0xff]  ;;  %v1003_v19 = vld [vmem:[%s1981_s1 + $0x118] sm:$0xff]  ;;  %v1020_v23 = vld [vmem:[%s1981_s1 + $0x1a0] sm:$0xff]  ;;  %v107_v10 = vsub.s32 5, %v1588_v61 }
   0x6   :  { %1269 = vmatpush3.bf16.msra.mxu0 %v1268_v8  ;;  %v36_v20 = vld [vmem:[%s1981_s1 + $0x10] sm:$0xff]  ;;  %v1272_v21 = vpack.c.bf16 %v1003_v19, %v1002_v18  ;;  %v37_v22 = vld [vmem:[%s1981_s1 + $0x18] sm:$0xff]  ;;  %v1021_v24 = vld [vmem:[%s1981_s1 + $0x1a8] sm:$0xff] }
   0x7   :  { %1301 = vmatpush3.bf16.msra.mxu1 %v1300_v12  ;;  %1271 = vmatprep.subr.bf16.mxu0 %v1270_v16  ;;  %v1304_v25 = vpack.c.bf16 %v37_v22, %v36_v20  ;;  %v1274_v26 = vpack.c.bf16 %v1021_v24, %v1020_v23  ;;  %v54_v27 = vld [vmem:[%s1981_s1 + $0xa0] sm:$0xff]  ;;  %v55_v28 = vld [vmem:[%s1981_s1 + $0xa8] sm:$0xff]  ;;  %v1022_v35 = vld [vmem:[%s1981_s1 + $0x1b0] sm:$0xff] }
   0x8   :  { %1303 = vmatprep.subr.bf16.mxu1 %v1302_v17  ;;  %v1004_v29 = vld [vmem:[%s1981_s1 + $0x120] sm:$0xff]  ;;  %v1306_v30 = vpack.c.bf16 %v55_v28, %v54_v27  ;;  %v1005_v31 = vld [vmem:[%s1981_s1 + $0x128] sm:$0xff]  ;;  %v1023_v36 = vld [vmem:[%s1981_s1 + $0x1b8] sm:$0xff] }
   0x9   :  { %v38_v32 = vld [vmem:[%s1981_s1 + $0x20] sm:$0xff]  ;;  %v39_v33 = vld [vmem:[%s1981_s1 + $0x28] sm:$0xff]  ;;  %v1276_v34 = vpack.c.bf16 %v1005_v31, %v1004_v29  ;;  %v56_v37 = vld [vmem:[%s1981_s1 + $0xb0] sm:$0xff]  ;;  %v1278_v39 = vpack.c.bf16 %v1023_v36, %v1022_v35  ;;  %v1665_v35 = vsub.s32 1, %v1588_v61 }
   0xa   :  { %1273 = vmatpush3.bf16.msra.mxu0 %v1272_v21  ;;  %v1308_v38 = vpack.c.bf16 %v39_v33, %v38_v32  ;;  %v57_v40 = vld [vmem:[%s1981_s1 + $0xb8] sm:$0xff]  ;;  %v1006_v41 = vld [vmem:[%s1981_s1 + $0x130] sm:$0xff]  ;;  %v1024_v46 = vld [vmem:[%s1981_s1 + $0x1c0] sm:$0xff] }
   0xb   :  { %1305 = vmatpush3.bf16.msra.mxu1 %v1304_v25  ;;  %1275 = vmatprep.subr.bf16.mxu0 %v1274_v26  ;;  %v1007_v42 = vld [vmem:[%s1981_s1 + $0x138] sm:$0xff]  ;;  %v1310_v43 = vpack.c.bf16 %v57_v40, %v56_v37  ;;  %v40_v44 = vld [vmem:[%s1981_s1 + $0x30] sm:$0xff]  ;;  %v1025_v48 = vld [vmem:[%s1981_s1 + $0x1c8] sm:$0xff] }
   0xc   :  { %1307 = vmatprep.subr.bf16.mxu1 %v1306_v30  ;;  %v41_v45 = vld [vmem:[%s1981_s1 + $0x38] sm:$0xff]  ;;  %v58_v49 = vld [vmem:[%s1981_s1 + $0xc0] sm:$0xff]  ;;  %v59_v50 = vld [vmem:[%s1981_s1 + $0xc8] sm:$0xff]  ;;  %v1280_v51 = vpack.c.bf16 %v1007_v42, %v1006_v41  ;;  %v1282_v53 = vpack.c.bf16 %v1025_v48, %v1024_v46  ;;  %v1678_v42 = vsub.s32 0, %v1588_v61 }
   0xd   :  { %v1312_v52 = vpack.c.bf16 %v41_v45, %v40_v44  ;;  %v1008_v54 = vld [vmem:[%s1981_s1 + $0x140] sm:$0xff]  ;;  %v1009_v55 = vld [vmem:[%s1981_s1 + $0x148] sm:$0xff]  ;;  %v1314_v57 = vpack.c.bf16 %v59_v50, %v58_v49  ;;  %v1026_v59 = vld [vmem:[%s1981_s1 + $0x1d0] sm:$0xff]  ;;  %v321_v49 = vsub.s32 6, %v1588_v61  ;;  %v445_v50 = vsub.s32 7, %v1588_v61 }
   0xe   :  { %1277 = vmatpush3.bf16.msra.mxu0 %v1276_v34  ;;  %v42_v56 = vld [vmem:[%s1981_s1 + $0x40] sm:$0xff]  ;;  %v43_v58 = vld [vmem:[%s1981_s1 + $0x48] sm:$0xff]  ;;  %v1027_v60 = vld [vmem:[%s1981_s1 + $0x1d8] sm:$0xff]  ;;  %v1284_v0 = vpack.c.bf16 %v1009_v55, %v1008_v54 }
   0xf   :  { %1309 = vmatpush3.bf16.msra.mxu1 %v1308_v38  ;;  %1279 = vmatprep.subr.bf16.mxu0 %v1278_v39  ;;  %v60_v62 = vld [vmem:[%s1981_s1 + $0xd0] sm:$0xff]  ;;  %v61_v63 = vld [vmem:[%s1981_s1 + $0xd8] sm:$0xff]  ;;  %v1316_v1 = vpack.c.bf16 %v43_v58, %v42_v56  ;;  %v1286_v2 = vpack.c.bf16 %v1027_v60, %v1026_v59  ;;  %v1028_v8 = vld [vmem:[%s1981_s1 + $0x1e0] sm:$0xff] }
  0x10   :  { %1311 = vmatprep.subr.bf16.mxu1 %v1310_v43  ;;  %v1010_v3 = vld [vmem:[%s1981_s1 + $0x150] sm:$0xff]  ;;  %v1011_v4 = vld [vmem:[%s1981_s1 + $0x158] sm:$0xff]  ;;  %v1318_v6 = vpack.c.bf16 %v61_v63, %v60_v62  ;;  %v1029_v9 = vld [vmem:[%s1981_s1 + $0x1e8] sm:$0xff] }
  0x11   :  { %v44_v5 = vld [vmem:[%s1981_s1 + $0x50] sm:$0xff]  ;;  %v45_v7 = vld [vmem:[%s1981_s1 + $0x58] sm:$0xff]  ;;  %v62_v12 = vld [vmem:[%s1981_s1 + $0xe0] sm:$0xff]  ;;  %v1288_v14 = vpack.c.bf16 %v1011_v4, %v1010_v3  ;;  %v1290_v18 = vpack.c.bf16 %v1029_v9, %v1028_v8 }
  0x12   :  { %1281 = vmatpush3.bf16.msra.mxu0 %v1280_v51  ;;  %v63_v13 = vld [vmem:[%s1981_s1 + $0xe8] sm:$0xff]  ;;  %v1012_v15 = vld [vmem:[%s1981_s1 + $0x160] sm:$0xff]  ;;  %v1320_v17 = vpack.c.bf16 %v45_v7, %v44_v5  ;;  %v1030_v24 = vld [vmem:[%s1981_s1 + $0x1f0] sm:$0xff] }
  0x13   :  { %1313 = vmatpush3.bf16.msra.mxu1 %v1312_v52  ;;  %1283 = vmatprep.subr.bf16.mxu0 %v1282_v53  ;;  %v1013_v16 = vld [vmem:[%s1981_s1 + $0x168] sm:$0xff]  ;;  %v46_v19 = vld [vmem:[%s1981_s1 + $0x60] sm:$0xff]  ;;  %v1322_v22 = vpack.c.bf16 %v63_v13, %v62_v12  ;;  %v1031_v25 = vld [vmem:[%s1981_s1 + $0x1f8] sm:$0xff] }
  0x14   :  { %1315 = vmatprep.subr.bf16.mxu1 %v1314_v57  ;;  %v1634_v20 = vld [vmem:[%s1982_s0] sm:$0xff]  ;;  %v1639_v21 = vld [vmem:[%s1982_s0 + $0x8] sm:$0xff]  ;;  %v64_v29 = vld [vmem:[%s1981_s1 + $0xf0] sm:$0xff]  ;;  %v1292_v32 = vpack.c.bf16 %v1013_v16, %v1012_v15  ;;  %v1294_v37 = vpack.c.bf16 %v1031_v25, %v1030_v24 }
  0x15   :  { %v47_v23 = vld [vmem:[%s1981_s1 + $0x68] sm:$0xff]  ;;  %v108_v26 = vrot.slane %v1634_v20, %v107_v10  ;;  %v116_v27 = vrot.slane %v1639_v21, %v107_v10  ;;  %v199_v28 = vrot.slane %v1634_v20, %v198_v11  ;;  %v65_v30 = vld [vmem:[%s1981_s1 + $0xf8] sm:$0xff]  ;;  %v207_v31 = vrot.slane %v1639_v21, %v198_v11  ;;  %v1014_v33 = vld [vmem:[%s1981_s1 + $0x170] sm:$0xff] }
  0x16   :  { %1285 = vmatpush3.bf16.msra.mxu0 %v1284_v0  ;;  %v1324_v36 = vpack.c.bf16 %v47_v23, %v46_v19  ;;  %v1015_v38 = vld [vmem:[%s1981_s1 + $0x178] sm:$0xff]  ;;  %v48_v39 = vld [vmem:[%s1981_s1 + $0x70] sm:$0xff]  ;;  %v1326_v43 = vpack.c.bf16 %v65_v30, %v64_v29  ;;  %v1048_v44 = vld [vmem:[%s1981_s1 + $0x280] sm:$0xff]  ;;  %v104_v53 = vrot.slane %v1634_v20, %v1665_v35  ;;  %v112_v54 = vrot.slane %v1639_v21, %v1665_v35 }
  0x17   :  { %1317 = vmatpush3.bf16.msra.mxu1 %v1316_v1  ;;  %1287 = vmatprep.subr.bf16.mxu0 %v1286_v2  ;;  %v119_v34 = vsel %vm117_vm0, %v116_v27, %v108_v26  ;;  %v49_v40 = vld [vmem:[%s1981_s1 + $0x78] sm:$0xff]  ;;  %v209_v41 = vsel %vm117_vm0, %v207_v31, %v199_v28  ;;  %v1049_v45 = vld [vmem:[%s1981_s1 + $0x288] sm:$0xff]  ;;  %v1080_v46 = vld [vmem:[%s1981_s1 + $0x380] sm:$0xff]  ;;  %v1296_v51 = vpack.c.bf16 %v1015_v38, %v1014_v33 }
  0x18   :  { %1319 = vmatprep.subr.bf16.mxu1 %v1318_v6  ;;  %186 = vmatprep.mubr.f32.mxu0 %v119_v34  ;;  %v1081_v48 = vld [vmem:[%s1981_s1 + $0x388] sm:$0xff]  ;;  %v1328_v52 = vpack.c.bf16 %v49_v40, %v48_v39  ;;  %v195_v55 = vrot.slane %v1634_v20, %v1678_v42  ;;  %v203_v56 = vrot.slane %v1639_v21, %v1678_v42  ;;  %v1032_v58 = vld [vmem:[%s1981_s1 + $0x200] sm:$0xff]  ;;  %v1050_v0 = vld [vmem:[%s1981_s1 + $0x290] sm:$0xff] }
  0x19   :  { %276 = vmatprep.mubr.f32.mxu1 %v209_v41  ;;  %v1330_v57 = vpack.c.bf16 %v1049_v45, %v1048_v44  ;;  %v1033_v59 = vld [vmem:[%s1981_s1 + $0x208] sm:$0xff]  ;;  %v1064_v60 = vld [vmem:[%s1981_s1 + $0x300] sm:$0xff]  ;;  %v1362_v62 = vpack.c.bf16 %v1081_v48, %v1080_v46  ;;  %v1051_v1 = vld [vmem:[%s1981_s1 + $0x298] sm:$0xff]  ;;  %v322_v4 = vrot.slane %v1634_v20, %v321_v49  ;;  %v330_v5 = vrot.slane %v1639_v21, %v321_v49 }
  0x1a   :  { %1289 = vmatpush3.bf16.msra.mxu0 %v1288_v14  ;;  %v1065_v63 = vld [vmem:[%s1981_s1 + $0x308] sm:$0xff]  ;;  %v1082_v2 = vld [vmem:[%s1981_s1 + $0x390] sm:$0xff]  ;;  %v1083_v3 = vld [vmem:[%s1981_s1 + $0x398] sm:$0xff]  ;;  %v118_v6 = vsel %vm117_vm0, %v112_v54, %v104_v53  ;;  %v1332_v7 = vpack.c.bf16 %v1033_v59, %v1032_v58  ;;  %v446_v8 = vrot.slane %v1634_v20, %v445_v50  ;;  %v454_v9 = vrot.slane %v1639_v21, %v445_v50 }
  0x1b   :  { %1321 = vmatpush3.bf16.msra.mxu1 %v1320_v17  ;;  %1291 = vmatprep.subr.bf16.mxu0 %v1290_v18  ;;  %v208_v10 = vsel %vm117_vm0, %v203_v56, %v195_v55  ;;  %v1364_v11 = vpack.c.bf16 %v1065_v63, %v1064_v60  ;;  %v1334_v12 = vpack.c.bf16 %v1051_v1, %v1050_v0  ;;  %v1034_v13 = vld [vmem:[%s1981_s1 + $0x210] sm:$0xff]  ;;  %v1035_v14 = vld [vmem:[%s1981_s1 + $0x218] sm:$0xff]  ;;  %v1052_v18 = vld [vmem:[%s1981_s1 + $0x2a0] sm:$0xff] }
  0x1c   :  { %1323 = vmatprep.subr.bf16.mxu1 %v1322_v22  ;;  %v1066_v15 = vld [vmem:[%s1981_s1 + $0x310] sm:$0xff]  ;;  %v1366_v16 = vpack.c.bf16 %v1083_v3, %v1082_v2  ;;  %v1067_v17 = vld [vmem:[%s1981_s1 + $0x318] sm:$0xff]  ;;  %v1053_v19 = vld [vmem:[%s1981_s1 + $0x2a8] sm:$0xff]  ;;  %v332_v24 = vsel %vm117_vm0, %v330_v5, %v322_v4  ;;  %v1336_v25 = vpack.c.bf16 %v1035_v14, %v1034_v13  ;;  %v456_v26 = vsel %vm117_vm0, %v454_v9, %v446_v8 }
  0x1d   :  { %v1084_v22 = vld [vmem:[%s1981_s1 + $0x3a0] sm:$0xff]  ;;  %v1085_v23 = vld [vmem:[%s1981_s1 + $0x3a8] sm:$0xff]  ;;  %v1368_v27 = vpack.c.bf16 %v1067_v17, %v1066_v15  ;;  %v1338_v28 = vpack.c.bf16 %v1053_v19, %v1052_v18  ;;  %v1054_v34 = vld [vmem:[%s1981_s1 + $0x2b0] sm:$0xff] }
  0x1e   :  { %1293 = vmatpush3.bf16.msra.mxu0 %v1292_v32  ;;  %v1036_v29 = vld [vmem:[%s1981_s1 + $0x220] sm:$0xff]  ;;  %v1037_v30 = vld [vmem:[%s1981_s1 + $0x228] sm:$0xff]  ;;  %v1370_v32 = vpack.c.bf16 %v1085_v23, %v1084_v22  ;;  %v1087_v38 = vld [vmem:[%s1981_s1 + $0x3b8] sm:$0xff] }
  0x1f   :  { %1325 = vmatpush3.bf16.msra.mxu1 %v1324_v36  ;;  %1295 = vmatprep.subr.bf16.mxu0 %v1294_v37  ;;  %v1068_v31 = vld [vmem:[%s1981_s1 + $0x320] sm:$0xff]  ;;  %v1069_v33 = vld [vmem:[%s1981_s1 + $0x328] sm:$0xff]  ;;  %v1055_v36 = vld [vmem:[%s1981_s1 + $0x2b8] sm:$0xff]  ;;  %v1340_v39 = vpack.c.bf16 %v1037_v30, %v1036_v29  ;;  %v317_v29 = vsub.s32 2, %v1588_v61 }
  0x20   :  { %1327 = vmatprep.subr.bf16.mxu1 %v1326_v43  ;;  %v1086_v37 = vld [vmem:[%s1981_s1 + $0x3b0] sm:$0xff]  ;;  %v1372_v40 = vpack.c.bf16 %v1069_v33, %v1068_v31  ;;  %v1342_v41 = vpack.c.bf16 %v1055_v36, %v1054_v34  ;;  %v1039_v44 = vld [vmem:[%s1981_s1 + $0x238] sm:$0xff]  ;;  %v1056_v49 = vld [vmem:[%s1981_s1 + $0x2c0] sm:$0xff]  ;;  %v441_v34 = vsub.s32 3, %v1588_v61 }
  0x21   :  { %v1038_v43 = vld [vmem:[%s1981_s1 + $0x230] sm:$0xff]  ;;  %v1374_v46 = vpack.c.bf16 %v1087_v38, %v1086_v37  ;;  %v1071_v48 = vld [vmem:[%s1981_s1 + $0x338] sm:$0xff]  ;;  %v1057_v50 = vld [vmem:[%s1981_s1 + $0x2c8] sm:$0xff] }
  0x22   :  { %1297 = vmatpush3.bf16.msra.mxu0 %v1296_v51  ;;  %v1070_v45 = vld [vmem:[%s1981_s1 + $0x330] sm:$0xff]  ;;  %v1088_v51 = vld [vmem:[%s1981_s1 + $0x3c0] sm:$0xff]  ;;  %v1344_v53 = vpack.c.bf16 %v1039_v44, %v1038_v43  ;;  %v1346_v55 = vpack.c.bf16 %v1057_v50, %v1056_v49  ;;  %v1073_v60 = vld [vmem:[%s1981_s1 + $0x348] sm:$0xff]  ;;  %v442_v61 = vrot.slane %v1634_v20, %v441_v34  ;;  %v450_v44 = vrot.slane %v1639_v21, %v441_v34 }
  0x23   :  { %1329 = vmatpush3.bf16.msra.mxu1 %v1328_v52  ;;  %1331 = vmatprep.subr.bf16.mxu0 %v1330_v57  ;;  %v1089_v52 = vld [vmem:[%s1981_s1 + $0x3c8] sm:$0xff]  ;;  %v1376_v54 = vpack.c.bf16 %v1071_v48, %v1070_v45  ;;  %v1040_v56 = vld [vmem:[%s1981_s1 + $0x240] sm:$0xff]  ;;  %v1059_v63 = vld [vmem:[%s1981_s1 + $0x2d8] sm:$0xff] }
  0x24   :  { %1363 = vmatprep.subr.bf16.mxu1 %v1362_v62  ;;  %v1041_v57 = vld [vmem:[%s1981_s1 + $0x248] sm:$0xff]  ;;  %v1072_v58 = vld [vmem:[%s1981_s1 + $0x340] sm:$0xff]  ;;  %v1378_v59 = vpack.c.bf16 %v1089_v52, %v1088_v51  ;;  %v1058_v62 = vld [vmem:[%s1981_s1 + $0x2d0] sm:$0xff]  ;;  %v1414_v51 = vmov 0.0|0.0  }
  0x25   :  { %187 = vmatmul.mubr.f32.vlgmr.msra.gmra.mrb[0].mxu0 %v118_v6  ;;  %v1090_v0 = vld [vmem:[%s1981_s1 + $0x3d0] sm:$0xff]  ;;  %v1091_v1 = vld [vmem:[%s1981_s1 + $0x3d8] sm:$0xff]  ;;  %v1348_v2 = vpack.c.bf16 %v1041_v57, %v1040_v56  ;;  %v1380_v3 = vpack.c.bf16 %v1073_v60, %v1072_v58  ;;  %v1350_v4 = vpack.c.bf16 %v1059_v63, %v1058_v62  ;;  %v1093_v13 = vld [vmem:[%s1981_s1 + $0x3e8] sm:$0xff] }
  0x26   :  { %277 = vmatmul.mubr.f32.vlgmr.msra.gmra.mrb[0].mxu1 %v208_v10  ;;  %1333 = vmatpush3.bf16.msra.mxu0 %v1332_v7  ;;  %v1042_v5 = vld [vmem:[%s1981_s1 + $0x250] sm:$0xff]  ;;  %v1043_v6 = vld [vmem:[%s1981_s1 + $0x258] sm:$0xff]  ;;  %v1382_v8 = vpack.c.bf16 %v1091_v1, %v1090_v0  ;;  %v1060_v10 = vld [vmem:[%s1981_s1 + $0x2e0] sm:$0xff] }
  0x27   :  { %1365 = vmatpush3.bf16.msra.mxu1 %v1364_v11  ;;  %1335 = vmatprep.subr.bf16.mxu0 %v1334_v12  ;;  %v1074_v7 = vld [vmem:[%s1981_s1 + $0x350] sm:$0xff]  ;;  %v1075_v9 = vld [vmem:[%s1981_s1 + $0x358] sm:$0xff]  ;;  %v1061_v11 = vld [vmem:[%s1981_s1 + $0x2e8] sm:$0xff]  ;;  %v1352_v14 = vpack.c.bf16 %v1043_v6, %v1042_v5 }
  0x28   :  { %1367 = vmatprep.subr.bf16.mxu1 %v1366_v16  ;;  %399 = vmatprep.mubr.f32.mxu0 %v332_v24  ;;  %v1092_v12 = vld [vmem:[%s1981_s1 + $0x3e0] sm:$0xff]  ;;  %v1384_v15 = vpack.c.bf16 %v1075_v9, %v1074_v7  ;;  %v1354_v16 = vpack.c.bf16 %v1061_v11, %v1060_v10  ;;  %v1045_v18 = vld [vmem:[%s1981_s1 + $0x268] sm:$0xff]  ;;  %v1062_v24 = vld [vmem:[%s1981_s1 + $0x2f0] sm:$0xff] }
  0x29   :  { %523 = vmatprep.mubr.f32.mxu1 %v456_v26  ;;  %v1044_v17 = vld [vmem:[%s1981_s1 + $0x260] sm:$0xff]  ;;  %v1386_v22 = vpack.c.bf16 %v1093_v13, %v1092_v12  ;;  %v1077_v23 = vld [vmem:[%s1981_s1 + $0x368] sm:$0xff]  ;;  %v1094_v26 = vld [vmem:[%s1981_s1 + $0x3f0] sm:$0xff] }
  0x2a   :  { %1337 = vmatpush3.bf16.msra.mxu0 %v1336_v25  ;;  %v1076_v19 = vld [vmem:[%s1981_s1 + $0x360] sm:$0xff]  ;;  %v1063_v25 = vld [vmem:[%s1981_s1 + $0x2f8] sm:$0xff]  ;;  %v1078_v37 = vld [vmem:[%s1981_s1 + $0x370] sm:$0xff] }
  0x2b   :  { %1369 = vmatpush3.bf16.msra.mxu1 %v1368_v27  ;;  %1339 = vmatprep.subr.bf16.mxu0 %v1338_v28  ;;  %v1095_v27 = vld [vmem:[%s1981_s1 + $0x3f8] sm:$0xff]  ;;  %v1356_v28 = vpack.c.bf16 %v1045_v18, %v1044_v17  ;;  %v1388_v30 = vpack.c.bf16 %v1077_v23, %v1076_v19  ;;  %v1358_v31 = vpack.c.bf16 %v1063_v25, %v1062_v24  ;;  %v538_v48 = vld [vmem:[%s1983_s2] sm:$0xff]  ;;  %v539_v49 = vld [vmem:[%s1983_s2 + $0x8] sm:$0xff]  ;;  %v1418_v25 = vmov 0  }
  0x2c   :  { %1371 = vmatprep.subr.bf16.mxu1 %v1370_v32  ;;  %v1046_v32 = vld [vmem:[%s1981_s1 + $0x270] sm:$0xff]  ;;  %v1047_v33 = vld [vmem:[%s1981_s1 + $0x278] sm:$0xff]  ;;  %v1390_v36 = vpack.c.bf16 %v1095_v27, %v1094_v26  ;;  %v1395_v50 = vpack.c.bf16 %v539_v49, %v538_v48  ;;  %v1096_v56 = vld [vmem:[%s1984_s6] ss:$0 sm:$0xff]  ;;  %v664_v23 = vcombine.high %v1634_v20, %v1634_v20  ;;  %v666_v24 = vpack.c.bf16 %v1634_v20, %v1634_v20 }
  0x2d   :  { %v1079_v38 = vld [vmem:[%s1981_s1 + $0x378] sm:$0xff]  ;;  %v540_v52 = vld [vmem:[%s1983_s2 + $0x10] sm:$0xff]  ;;  %542 = vrot.lane.b32.xlu0 %v1096_v56, %s1417_s10  ;;  %v854_v26 = vcombine.high %v1639_v21, %v1639_v21 }
  0x2e   :  { %1341 = vmatpush3.bf16.msra.mxu0 %v1340_v39  ;;  %v1360_v39 = vpack.c.bf16 %v1047_v33, %v1046_v32  ;;  %v1392_v43 = vpack.c.bf16 %v1079_v38, %v1078_v37  ;;  %v706_v27 = vsel %vm704_vm5, %v666_v24, 0  ;;  %v1943_v33 = vld [vmem:[%s1986_s5] sm:$0xff] }
  0x2f   :  { %1373 = vmatpush3.bf16.msra.mxu1 %v1372_v40  ;;  %1343 = vmatprep.subr.bf16.mxu0 %v1342_v41  ;;  %v318_v40 = vrot.slane %v1634_v20, %v317_v29  ;;  %v326_v41 = vrot.slane %v1639_v21, %v317_v29  ;;  %v857_v29 = vpack.c.bf16 %v854_v26, %v854_v26 }
  0x30   :  { %1375 = vmatprep.subr.bf16.mxu1 %v1374_v46  ;;  %v455_v46 = vsel %vm117_vm0, %v450_v44, %v442_v61 }
  0x31   :  { %v331_v45 = vsel %vm117_vm0, %v326_v41, %v318_v40  ;;  %v31_v40 = vld [vmem:[%s1986_s5 + $0x10] sm:$0xff] }
  0x32   :  { %1345 = vmatpush3.bf16.msra.mxu0 %v1344_v53  ;;  %v541_v53 = vld [vmem:[%s1983_s2 + $0x18] sm:$0xff] }
  0x33   :  { %1377 = vmatpush3.bf16.msra.mxu1 %v1376_v54  ;;  %1347 = vmatprep.subr.bf16.mxu0 %v1346_v55  ;;  %v1398_v54 = vpack.c.bf16 %v541_v53, %v540_v52  ;;  %v1416_v55 = vmov 0.0  }
  0x34   :  { %1379 = vmatprep.subr.bf16.mxu1 %v1378_v59 }
  0x36   :  { %1349 = vmatpush3.bf16.msra.mxu0 %v1348_v2 }
  0x37   :  { %1381 = vmatpush3.bf16.msra.mxu1 %v1380_v3  ;;  %1351 = vmatprep.subr.bf16.mxu0 %v1350_v4 }
  0x38   :  { %1383 = vmatprep.subr.bf16.mxu1 %v1382_v8 }
  0x3a   :  { %1353 = vmatpush3.bf16.msra.mxu0 %v1352_v14 }
  0x3b   :  { %1385 = vmatpush3.bf16.msra.mxu1 %v1384_v15  ;;  %1355 = vmatprep.subr.bf16.mxu0 %v1354_v16  ;;  %v620_v16 = vand.u32 127, %v101_v47  ;;  %v667_v47 = vpack.c.bf16 %v664_v23, %v664_v23 }
  0x3c   :  { %1387 = vmatprep.subr.bf16.mxu1 %v1386_v22 }
  0x3d   :  { %v626_v17 = vcvt.s32.f32 %v620_v16 }
  0x3e   :  { %1357 = vmatpush3.bf16.msra.mxu0 %v1356_v28  ;;  %v856_v28 = vpack.c.bf16 %v1639_v21, %v1639_v21 }
  0x3f   :  { %1389 = vmatpush3.bf16.msra.mxu1 %v1388_v30  ;;  %1359 = vmatprep.subr.bf16.mxu0 %v1358_v31  ;;  %v1411_v30 = vld [vmem:[%s1985_s3] sm:$0xff]   ;;  %v1413_v31 = vld [vmem:[%s1985_s3 + $0x8] sm:$0xff]  }
  0x40   :  { %1391 = vmatprep.subr.bf16.mxu1 %v1390_v36  ;;  %v879_v20 = vsel %vm704_vm5, %v856_v28, 0  ;;  %v30_v36 = vld [vmem:[%s1986_s5 + $0x8] sm:$0xff] }
  0x42   :  { %1361 = vmatpush3.bf16.msra.mxu0 %v1360_v39 }
  0x43   :  { %1393 = vmatpush3.bf16.msra.mxu1 %v1392_v43  ;;  %1394 = vmatprep.subr.bf16.mxu0 %v1414_v51 }
  0x44   :  { %1101 = vmatprep.subr.msk.bf16.mxu1 %vm704_vm5, %v667_v47 }
  0x45   :  { %400 = vmatmul.mubr.f32.vlgmr.msra.gmra.mrb[2].mxu0 %v331_v45 }
  0x46   :  { %524 = vmatmul.mubr.f32.vlgmr.msra.gmra.mrb[2].mxu1 %v455_v46  ;;  %1396 = vmatpush3.bf16.msra.mxu0 %v1395_v50 }
  0x47   :  { %1397 = vmatprep.subr.bf16.mxu0 %v1414_v51  ;;  %1263 = vmatprep.mubr.msk.f32.mxu0 %vm1415_vm1, %v1416_v55  ;;  %v1419_v51 = vmov 4  }
  0x48   :  { %743 = vmatprep.mubr.bf16.mxu1 %v1418_v25  ;;  %712 = vmatpush1.bf16.msra.mxu1 %v706_v27  ;;  %v1420_v27 = vmov 5  }
  0x49   :  { %1105 = vmatprep.subr.msk.bf16.mxu1 %vm704_vm5, %v857_v29  ;;  %1407 = vset.pattern.permute.xlu0 %v1419_v51 }
  0x4a   :  { %1399 = vmatpush3.bf16.msra.mxu0 %v1398_v54  ;;  %1408 = vset.pattern.permute.xlu1 %v1419_v51 }
  0x4b   :  { %1102 = vmatmul.mubr.msk.bf16.vlgmr.msra.gmra.mrb[4].mxu1 %vm647_vm6, %v1411_v30 }
  0x4c   :  { %885 = vmatpush1.bf16.msra.mxu1 %v879_v20  ;;  %753 = vmatprep.mubr.bf16.mxu1 %v1418_v25 }
  0x53   :  { %1103 = vmatmul.mubr.msk.bf16.gmra.mrb[8].mxu1 %vm647_vm6, %v1413_v31 }
  0x54   :  { %916 = vmatprep.mubr.bf16.mxu1 %v1418_v25 }
  0x5b   :  { %1106 = vmatmul.mubr.msk.bf16.vlgmr.msra.gmra.mrb[12].mxu1 %vm647_vm6, %v1411_v30 }
  0x5c   :  { %926 = vmatprep.mubr.bf16.mxu1 %v1418_v25 }
  0x63   :  { %1107 = vmatmul.mubr.msk.bf16.gmra.mrb[16].mxu1 %vm647_vm6, %v1413_v31 }
  0x9f   :  { %v543_v11 = vpop.permute.xlu0 %542 }
  0xf8   :  { %v1142_v57 = vpop.f32.mrb[0].mxu0 }
  0xf9   :  { %v1177_v58 = vpop.f32.mrb[0].mxu1  ;;  %v1143_v59 = vpop.f32.mrb[1].mxu0 }
  0xfa   :  { %v1144_v60 = vadd.f32 %v1143_v59, %v1142_v57  ;;  %v1178_v62 = vpop.f32.mrb[1].mxu1 }
  0xfb   :  { %v1179_v63 = vadd.f32 %v1178_v62, %v1177_v58 }
  0xfd   :  { %v279_v0 = vadd.f32 %v1179_v63, %v1144_v60 }
 0x118   :  { %v1212_v1 = vpop.f32.mrb[2].mxu0 }
 0x119   :  { %v1213_v2 = vpop.f32.mrb[3].mxu0  ;;  %v1247_v3 = vpop.f32.mrb[2].mxu1 }
 0x11a   :  { %v1214_v4 = vadd.f32 %v1213_v2, %v1212_v1  ;;  %v1248_v5 = vpop.f32.mrb[3].mxu1 }
 0x11b   :  { %v1249_v6 = vadd.f32 %v1248_v5, %v1247_v3 }
 0x11c   :  { %v405_v7 = vadd.f32 %v1214_v4, %v279_v0 }
 0x11e   :  { %v529_v8 = vadd.f32 %v1249_v6, %v405_v7 }
 0x120   :  { %v536_v9 = vadd.f32 %v1096_v56, %v529_v8  ;;  %v745_v56 = vpop.f32.mrb[4].mxu1 }
 0x121   :  { %v747_v57 = vpop.f32.mrb[5].mxu1 }
 0x122   :  { %v537_v10 = vmax.f32 %v536_v9, 0.0  ;;  %v749_v58 = vpop.f32.mrb[6].mxu1 }
 0x123   :  { %v751_v63 = vpop.f32.mrb[7].mxu1 }
 0x124   :  { %1264 = vmatmul.mubr.msk.f32.vlgmr.msra.gmra.mrb[4].mxu0 %vm545_vm2, %v537_v10 }
 0x125   :  { %816 = vmatprep.mubr.bf16.mxu0 %v1418_v25 }
 0x126   :  { %v755_v3 = vpop.f32.mrb[8].mxu1 }
 0x127   :  { %v757_v4 = vpop.f32.mrb[9].mxu1 }
 0x128   :  { %v759_v5 = vpop.f32.mrb[10].mxu1 }
 0x129   :  { %v761_v7 = vpop.f32.mrb[11].mxu1 }
 0x1f7   :  { %v615_v12 = vpop.f32.mrb[4].mxu0 }
 0x1f8   :  { %v616_v13 = vadd.f32 %v615_v12, %v543_v11  ;;  %v1265_v14 = vpop.f32.mrb[5].mxu0  ;;  %v918_v11 = vpop.f32.mrb[12].mxu1 }
 0x1f9   :  { %v920_v12 = vpop.f32.mrb[13].mxu1 }
 0x1fa   :  { %v622_v15 = vsel %vm621_vm3, %v616_v13, -inf }
 0x1fb   :  { %623 = vmax.xlane.f32.xlu0 %v622_v15 }
 0x288   :  { %v624_v18 = vpop.xlane.xlu0 %623 }
 0x289   :  { %vm625_vm4 = vcmp.eq.f32.partialorder %v616_v13, %v624_v18  ;;  %v922_v13 = vpop.f32.mrb[14].mxu1 }
 0x28a   :  { %v627_v19 = vsel %vm625_vm4, %v626_v17, 4.0  ;;  %v924_v15 = vpop.f32.mrb[15].mxu1 }
 0x28b   :  { %v628_v22 = vsel %vm621_vm3, %v627_v19, inf  ;;  %v928_v19 = vpop.f32.mrb[16].mxu1 }
 0x28c   :  { %629 = vmin.xlane.f32.xlu1 %v628_v22  ;;  %v930_v22 = vpop.f32.mrb[17].mxu1 }
 0x28d   :  { %v932_v23 = vpop.f32.mrb[18].mxu1 }
 0x28e   :  { %v934_v26 = vpop.f32.mrb[19].mxu1 }
 0x319   :  { %v630_v21 = vpop.xlane.xlu1 %629 }
 0x31a   :  { %vm631_vm7 = vcmp.eq.f32.partialorder %v626_v17, %v630_v21 }
 0x31b   :  { %v1098_v32 = vsel %vm631_vm7, 1.0, %v1416_v55 }
 0x31c   :  { %v642_v34 = vrot.slane %v1098_v32, %v1678_v42  ;;  %v32_v42 = vld [vmem:[%s1986_s5 + $0x18] sm:$0xff]  ;;  %v833_v61 = vrot.slane %v1098_v32, %v1665_v35 }
 0x31e   :  { %v643_v37 = vmul.f32 %v642_v34, %v1943_v33  ;;  %v644_v39 = vmul.f32 %v642_v34, %v30_v36  ;;  %v645_v43 = vmul.f32 %v642_v34, %v31_v40  ;;  %v646_v45 = vmul.f32 %v642_v34, %v32_v42 }
 0x31f   :  { %v834_v48 = vmul.f32 %v833_v61, %v1943_v33  ;;  %v835_v50 = vmul.f32 %v833_v61, %v30_v36  ;;  %v836_v53 = vmul.f32 %v833_v61, %v31_v40  ;;  %v837_v54 = vmul.f32 %v833_v61, %v32_v42 }
 0x320   :  { %v648_v38 = vsel %vm647_vm6, %v643_v37, 0.0  ;;  %v651_v41 = vsel %vm647_vm6, %v644_v39, 0.0  ;;  %v654_v44 = vsel %vm647_vm6, %v645_v43, 0.0  ;;  %v657_v46 = vsel %vm647_vm6, %v646_v45, 0.0 }
 0x321   :  { %649 = vadd.xlane.f32.xlu1 %v648_v38  ;;  %v838_v49 = vsel %vm647_vm6, %v834_v48, 0.0  ;;  %v841_v52 = vsel %vm647_vm6, %v835_v50, 0.0  ;;  %v844_v35 = vsel %vm647_vm6, %v836_v53, 0.0  ;;  %v847_v55 = vsel %vm647_vm6, %v837_v54, 0.0  ;;  %v638_v54 = vld [vmem:[%s1987_s4] sm:$0x3] }
 0x325   :  { %652 = vadd.xlane.f32.xlu1 %v651_v41 }
 0x329   :  { %655 = vadd.xlane.f32.xlu1 %v654_v44 }
 0x32d   :  { %658 = vadd.xlane.f32.xlu1 %v657_v46 }
 0x331   :  { %839 = vadd.xlane.f32.xlu1 %v838_v49 }
 0x335   :  { %842 = vadd.xlane.f32.xlu1 %v841_v52 }
 0x339   :  { %845 = vadd.xlane.f32.xlu1 %v844_v35 }
 0x33d   :  { %848 = vadd.xlane.f32.xlu1 %v847_v55 }
 0x3ae   :  { %v650_v59 = vpop.xlane.xlu1 %649 }
 0x3af   :  { %v660_v60 = vadd.f32 %v650_v59, %v1943_v33 }
 0x3b1   :  { %670 = vperm.xlu0 %1407, %v660_v60  }
 0x3b2   :  { %v653_v62 = vpop.xlane.xlu1 %652 }
 0x3b3   :  { %v661_v0 = vadd.f32 %v653_v62, %v30_v36 }
 0x3b5   :  { %675 = vperm.xlu1 %1408, %v661_v0  }
 0x3b6   :  { %v656_v1 = vpop.xlane.xlu1 %655 }
 0x3b7   :  { %v662_v2 = vadd.f32 %v656_v1, %v31_v40 }
 0x3b9   :  { %680 = vperm.xlu1 %1408, %v662_v2  }
 0x3ba   :  { %v659_v6 = vpop.xlane.xlu1 %658 }
 0x3bb   :  { %v663_v8 = vadd.f32 %v659_v6, %v32_v42 }
 0x3bd   :  { %685 = vperm.xlu1 %1408, %v663_v8  }
 0x3be   :  { %v840_v9 = vpop.xlane.xlu1 %839 }
 0x3bf   :  { %v850_v10 = vadd.f32 %v840_v9, %v1943_v33 }
 0x3c1   :  { %860 = vperm.xlu1 %1408, %v850_v10  }
 0x3c2   :  { %v843_v14 = vpop.xlane.xlu1 %842 }
 0x3c3   :  { %v851_v16 = vadd.f32 %v843_v14, %v30_v36 }
 0x3c5   :  { %865 = vperm.xlu1 %1408, %v851_v16  }
 0x3c6   :  { %v846_v17 = vpop.xlane.xlu1 %845 }
 0x3c7   :  { %v852_v18 = vadd.f32 %v846_v17, %v31_v40 }
 0x3c9   :  { %870 = vperm.xlu1 %1408, %v852_v18  }
 0x3ca   :  { %v849_v24 = vpop.xlane.xlu1 %848 }
 0x3cb   :  { %v853_v47 = vadd.f32 %v849_v24, %v32_v42 }
 0x3cd   :  { %875 = vperm.xlu1 %1408, %v853_v47  }
 0x3d1   :  { %1409 = vset.pattern.permute.xlu1 %v1420_v27 }
 0x3d2   :  { %778 = vperm.xlu1 %1409, %v1943_v33  }
 0x430   :  { %v671_v28 = vpop.permute.xlu0 %670 }
 0x431   :  { %v746_v29 = vadd.f32 %v745_v56, %v671_v28  ;;  %v748_v30 = vadd.f32 %v747_v57, %v671_v28 }
 0x433   :  { %v764_v32 = vmax.f32 %v746_v29, 0.0  ;;  %v765_v34 = vmax.f32 %v748_v30, 0.0 }
 0x434   :  { %v676_v20 = vpop.permute.xlu1 %675 }
 0x435   :  { %v750_v31 = vadd.f32 %v749_v58, %v676_v20  ;;  %v752_v21 = vadd.f32 %v751_v63, %v676_v20 }
 0x437   :  { %v766_v36 = vmax.f32 %v750_v31, 0.0  ;;  %v767_v37 = vmax.f32 %v752_v21, 0.0 }
 0x438   :  { %v681_v38 = vpop.permute.xlu1 %680 }
 0x439   :  { %v772_v39 = vpack.c.bf16 %v766_v36, %v764_v32  ;;  %v773_v40 = vpack.c.bf16 %v767_v37, %v765_v34  ;;  %v756_v41 = vadd.f32 %v755_v3, %v681_v38  ;;  %v758_v43 = vadd.f32 %v757_v4, %v681_v38 }
 0x43b   :  { %784 = vmatprep.subr.bf16.mxu0 %v773_v40  ;;  %v768_v44 = vmax.f32 %v756_v41, 0.0  ;;  %v769_v45 = vmax.f32 %v758_v43, 0.0 }
 0x43c   :  { %785 = vmatpush1.bf16.msra.mxu0 %v772_v39  ;;  %v686_v42 = vpop.permute.xlu1 %685 }
 0x43d   :  { %v760_v61 = vadd.f32 %v759_v5, %v686_v42  ;;  %v762_v33 = vadd.f32 %v761_v7, %v686_v42 }
 0x43f   :  { %v770_v46 = vmax.f32 %v760_v61, 0.0  ;;  %v771_v48 = vmax.f32 %v762_v33, 0.0 }
 0x440   :  { %v861_v49 = vpop.permute.xlu1 %860 }
 0x441   :  { %v774_v50 = vpack.c.bf16 %v770_v46, %v768_v44  ;;  %v775_v51 = vpack.c.bf16 %v771_v48, %v769_v45  ;;  %v919_v52 = vadd.f32 %v918_v11, %v861_v49  ;;  %v921_v53 = vadd.f32 %v920_v12, %v861_v49 }
 0x443   :  { %786 = vmatprep.subr.bf16.mxu0 %v775_v51  ;;  %v937_v57 = vmax.f32 %v919_v52, 0.0  ;;  %v938_v58 = vmax.f32 %v921_v53, 0.0 }
 0x444   :  { %787 = vmatpush1.bf16.msra.mxu0 %v774_v50  ;;  %v866_v35 = vpop.permute.xlu1 %865 }
 0x445   :  { %v923_v55 = vadd.f32 %v922_v13, %v866_v35  ;;  %v925_v56 = vadd.f32 %v924_v15, %v866_v35 }
 0x447   :  { %v939_v59 = vmax.f32 %v923_v55, 0.0  ;;  %v940_v60 = vmax.f32 %v925_v56, 0.0  ;;  %1104 = vmatmul.mubr.msk.bf16.vlgmr.msra.gmra.mrb[8].mxu0 %vm545_vm2, %v638_v54 }
 0x448   :  { %v871_v62 = vpop.permute.xlu1 %870  ;;  %981 = vmatprep.mubr.bf16.mxu0 %v1418_v25 }
 0x449   :  { %v945_v63 = vpack.c.bf16 %v939_v59, %v937_v57  ;;  %v946_v0 = vpack.c.bf16 %v940_v60, %v938_v58  ;;  %v929_v1 = vadd.f32 %v928_v19, %v871_v62  ;;  %v931_v2 = vadd.f32 %v930_v22, %v871_v62 }
 0x44b   :  { %949 = vmatprep.subr.bf16.mxu0 %v946_v0  ;;  %v941_v6 = vmax.f32 %v929_v1, 0.0  ;;  %v942_v7 = vmax.f32 %v931_v2, 0.0 }
 0x44c   :  { %950 = vmatpush1.bf16.msra.mxu0 %v945_v63  ;;  %v876_v3 = vpop.permute.xlu1 %875 }
 0x44d   :  { %v933_v4 = vadd.f32 %v932_v23, %v876_v3  ;;  %v935_v5 = vadd.f32 %v934_v26, %v876_v3 }
 0x44f   :  { %v943_v8 = vmax.f32 %v933_v4, 0.0  ;;  %v944_v9 = vmax.f32 %v935_v5, 0.0 }
 0x451   :  { %v947_v10 = vpack.c.bf16 %v943_v8, %v941_v6  ;;  %v948_v11 = vpack.c.bf16 %v944_v9, %v942_v7  ;;  %v779_v25 = vpop.permute.xlu1 %778 }
 0x453   :  { %951 = vmatprep.subr.bf16.mxu0 %v948_v11 }
 0x454   :  { %952 = vmatpush1.bf16.msra.mxu0 %v947_v10 }
 0x457   :  { %1108 = vmatmul.mubr.msk.bf16.vlgmr.msra.gmra.mrb[12].mxu0 %vm545_vm2, %v638_v54 }
 0x51a   :  { %v818_v12 = vpop.f32.mrb[8].mxu0 }
 0x51b   :  { %v820_v13 = vpop.f32.mrb[9].mxu0  ;;  %v819_v14 = vadd.f32 %v818_v12, %v779_v25 }
 0x51c   :  { %v822_v15 = vpop.f32.mrb[10].mxu0  ;;  %v821_v16 = vadd.f32 %v820_v13, %v779_v25 }
 0x51d   :  { %v823_v17 = vpop.f32.mrb[11].mxu0 }
 0x51e   :  { %v827_v18 = vcombine.low %v819_v14, %v821_v16 }
 0x520   :  { %829 = vst [vmem:[%s1988_s7] sm:$0xff] %v827_v18 }
 0x52a   :  { %v983_v19 = vpop.f32.mrb[12].mxu0 }
 0x52b   :  { %v984_v22 = vadd.f32 %v983_v19, %v779_v25  ;;  %v985_v23 = vpop.f32.mrb[13].mxu0 }
 0x52c   :  { %v986_v24 = vadd.f32 %v985_v23, %v779_v25  ;;  %v987_v26 = vpop.f32.mrb[14].mxu0 }
 0x52d   :  { %v988_v47 = vpop.f32.mrb[15].mxu0 }
 0x52e   :  { %v992_v27 = vcombine.low %v984_v22, %v986_v24 }
 0x530   :  { %1109 = vst [vmem:[%s1988_s7 + $0x8] sm:$0xff] %v992_v27 }

</bundles_post_ra>
